<compile_context>
chip_gen: v6e
topology: v6e:2x2x1
jax: 0.10.0
libtpu: 0.0.40
codegen_flags: <defaults>
</compile_context>

<pallas_src>
import functools

import jax
import jax.numpy as jnp
from jax import lax
from jax.experimental import pallas as pl
from jax.experimental.pallas import tpu as pltpu


# --------------------------------------------------------------------------
# Fused kernel: conv3x3+BN+ELU -> conv3x3+BN+ELU -> ConvTranspose2d(2, s=2)
# --------------------------------------------------------------------------
def _unet_bridge_kernel(x_ref, b1_ref, sb1_ref, b2_ref, sb2_ref, bu_ref,
                        brow_ref, o_ref, p1_ref, p2_ref, *, H, W, Cup):
    # Row-halo scratch buffers, re-zeroed every grid step (tiny; keeps the
    # kernel correct if the batch axis is sharded across TensorCores).
    p1_ref[...] = jnp.zeros_like(p1_ref)
    p2_ref[...] = jnp.zeros_like(p2_ref)
    p1_ref[1:H + 1, :] = x_ref[0]

    def conv_bn_elu(p_ref, band_ref, sb_ref):
        # 3x3 conv as three lane-dense band matmuls (one per row shift dh).
        # Width shifts + width zero-padding are folded into band_ref, so the
        # input / output stay in the (H, W*C) layout with no relayouts.
        acc = jnp.dot(p_ref[0:H, :], band_ref[0],
                      preferred_element_type=jnp.float32)
        acc = acc + jnp.dot(p_ref[1:H + 1, :], band_ref[1],
                            preferred_element_type=jnp.float32)
        acc = acc + jnp.dot(p_ref[2:H + 2, :], band_ref[2],
                            preferred_element_type=jnp.float32)
        y = acc * sb_ref[0:1, :] + sb_ref[1:2, :]        # eval-mode BN, fused
        # ELU(alpha=1); exp argument clamped so the inactive branch is safe.
        return jnp.where(y > 0, y, jnp.exp(jnp.minimum(y, 0.0)) - 1.0)

    y1 = conv_bn_elu(p1_ref, b1_ref, sb1_ref)            # (H, W*Cmid)
    p2_ref[1:H + 1, :] = y1                              # halo stays in VMEM
    y2 = conv_bn_elu(p2_ref, b2_ref, sb2_ref)            # (H, W*Cmid)

    # ConvTranspose2d(k=2, stride=2): ONE matmul with columns ordered
    # (kh, w, kw, cup); the (H, 4*W*Cup) result reshapes row-major into the
    # row-interleaved (2H, 2W*Cup) lane-dense output slab.
    up = jnp.dot(y2, bu_ref[...], preferred_element_type=jnp.float32)
    o_ref[0] = up.reshape(2 * H, 2 * W * Cup) + brow_ref[...]


# --------------------------------------------------------------------------
# Full module forward (NCHW in / NCHW out, like PyTorch)
# --------------------------------------------------------------------------
def unet2d_bridge_forward(x_nchw, p):
    B, Cin, H, W = x_nchw.shape
    Cmid = p["w1"].shape[-1]
    Cup = p["wt"].shape[-1]

    # NCHW -> NHWC -> lane-dense (B, H, W*Cin)
    x = jnp.transpose(x_nchw, (0, 2, 3, 1)).reshape(B, H, W * Cin)

    # ---- weight plumbing (cheap, XLA side, once per call) -----------------
    # sel[w_in, dw, w_out] = 1 iff w_in == w_out + dw - 1 (pad=1 in width).
    wi = jnp.arange(W)[:, None, None]
    dw = jnp.arange(3)[None, :, None]
    wo = jnp.arange(W)[None, None, :]
    sel = (wi == wo + dw - 1).astype(jnp.float32)                 # (W, 3, W)

    # band[dh, w_in*Cin + ci, w_out*Cout + co] = w[dh, w_in-w_out+1, ci, co]
    band1 = jnp.einsum("pdq,hdio->hpiqo", sel,
                       p["w1"]).reshape(3, W * Cin, W * Cmid)
    band2 = jnp.einsum("pdq,hdio->hpiqo", sel,
                       p["w2"]).reshape(3, W * Cmid, W * Cmid)

    # BN scale/bias pre-tiled to lane rows of the (H, W*Cmid) layout.
    sb1 = jnp.stack([jnp.tile(p["scale1"], W), jnp.tile(p["bias1"], W)])
    sb2 = jnp.stack([jnp.tile(p["scale2"], W), jnp.tile(p["bias2"], W)])

    # Up-conv weight as a single block-diagonal matrix:
    # bu[w*Cmid+ci, kh*(2W*Cup) + w*(2*Cup) + kw*Cup + co] = wt[kh,kw,ci,co]
    wt2 = jnp.transpose(p["wt"], (0, 2, 1, 3)).reshape(2, Cmid, 2 * Cup)
    eye_w = jnp.eye(W, dtype=jnp.float32)
    bu = jnp.einsum("wv,hio->wihvo", eye_w,
                    wt2).reshape(W * Cmid, 4 * W * Cup)
    brow = jnp.tile(p["bt"], 2 * W).reshape(1, 2 * W * Cup)       # lane row

    cost = pl.CostEstimate(
        flops=2 * B * H * (3 * (W * Cin) * (W * Cmid)
                           + 3 * (W * Cmid) * (W * Cmid)
                           + (W * Cmid) * (4 * W * Cup)),
        transcendentals=2 * B * H * W * Cmid,
        bytes_accessed=4 * (B * H * W * Cin + B * 4 * H * W * Cup
                            + 3 * W * Cin * W * Cmid
                            + 3 * W * Cmid * W * Cmid
                            + W * Cmid * 4 * W * Cup
                            + 4 * W * Cmid + 2 * W * Cup),
    )

    kernel = functools.partial(_unet_bridge_kernel, H=H, W=W, Cup=Cup)

    out = pl.pallas_call(
        kernel,
        out_shape=jax.ShapeDtypeStruct((B, 2 * H, 2 * W * Cup), jnp.float32),
        grid_spec=pltpu.PrefetchScalarGridSpec(
            num_scalar_prefetch=0,
            grid=(B,),
            in_specs=[
                pl.BlockSpec((1, H, W * Cin), lambda b: (b, 0, 0)),
                pl.BlockSpec((3, W * Cin, W * Cmid), lambda b: (0, 0, 0)),
                pl.BlockSpec((2, W * Cmid), lambda b: (0, 0)),
                pl.BlockSpec((3, W * Cmid, W * Cmid), lambda b: (0, 0, 0)),
                pl.BlockSpec((2, W * Cmid), lambda b: (0, 0)),
                pl.BlockSpec((W * Cmid, 4 * W * Cup), lambda b: (0, 0)),
                pl.BlockSpec((1, 2 * W * Cup), lambda b: (0, 0)),
            ],
            out_specs=pl.BlockSpec((1, 2 * H, 2 * W * Cup),
                                   lambda b: (b, 0, 0)),
            scratch_shapes=[
                pltpu.VMEM((H + 2, W * Cin), jnp.float32),    # padded input
                pltpu.VMEM((H + 2, W * Cmid), jnp.float32),   # padded conv1
            ],
        ),
        compiler_params=pltpu.CompilerParams(
            dimension_semantics=("parallel",)),
        cost_estimate=cost,
    )(x, band1, sb1, band2, sb2, bu, brow)

    # Free reshape (splits the lane-dense last dim), then NHWC -> NCHW.
    out = out.reshape(B, 2 * H, 2 * W, Cup)
    return jnp.transpose(out, (0, 3, 1, 2))


# --------------------------------------------------------------------------
# Deterministic parameter construction (synthetic, shapes match the module)
# --------------------------------------------------------------------------
def make_params(key, in_channels, out_channels, eps=1e-5):
    ks = jax.random.split(key, 14)
    Cin, Cout, Cup = in_channels, out_channels, out_channels // 2

    def bn(kg, kb, km, kv, C):
        gamma = jax.random.uniform(kg, (C,), minval=0.5, maxval=1.5)
        beta = jax.random.normal(kb, (C,)) * 0.1
        mean = jax.random.normal(km, (C,)) * 0.1
        var = jax.random.uniform(kv, (C,), minval=0.5, maxval=1.5)
        scale = gamma / jnp.sqrt(var + eps)
        bias = beta - mean * scale
        return scale.astype(jnp.float32), bias.astype(jnp.float32)

    w1 = jax.random.normal(ks[0], (3, 3, Cin, Cout), jnp.float32) * 0.1   # HWIO
    scale1, bias1 = bn(ks[1], ks[2], ks[3], ks[4], Cout)
    w2 = jax.random.normal(ks[5], (3, 3, Cout, Cout), jnp.float32) * 0.1
    scale2, bias2 = bn(ks[6], ks[7], ks[8], ks[9], Cout)
    # ConvTranspose2d weight (PyTorch: (Cin, Cout, kH, kW)) stored as
    # (kH, kW, Cin, Cout).
    wt = jax.random.normal(ks[10], (2, 2, Cout, Cup), jnp.float32) * 0.1
    bt = jax.random.normal(ks[11], (Cup,), jnp.float32) * 0.1
    return dict(w1=w1, scale1=scale1, bias1=bias1,
                w2=w2, scale2=scale2, bias2=bias2, wt=wt, bt=bt)


# --------------------------------------------------------------------------
# Pure-JAX reference (independent of the kernel's band-matmul formulation)
# --------------------------------------------------------------------------
def reference_forward(x_nchw, p):
    x = jnp.transpose(x_nchw, (0, 2, 3, 1))

    def block(x, w, s, b):
        y = lax.conv_general_dilated(
            x, w, window_strides=(1, 1), padding=((1, 1), (1, 1)),
            dimension_numbers=("NHWC", "HWIO", "NHWC"))
        y = y * s + b
        return jnp.where(y > 0, y, jnp.exp(y) - 1.0)

    y = block(x, p["w1"], p["scale1"], p["bias1"])
    y = block(y, p["w2"], p["scale2"], p["bias2"])
    B, H, W, C = y.shape
    Cup = p["wt"].shape[-1]
    up = jnp.einsum("bhwc,klcf->bhkwlf", y, p["wt"])    # (B,H,2,W,2,Cup)
    up = up.reshape(B, 2 * H, 2 * W, Cup) + p["bt"]
    return jnp.transpose(up, (0, 3, 1, 2))


if __name__ == "__main__":
    B, Cin, Cout, H, W = 2, 4, 8, 16, 16
    key = jax.random.PRNGKey(0)
    k_x, k_p = jax.random.split(key)
    x = jax.random.normal(k_x, (B, Cin, H, W), jnp.float32)   # NCHW input
    params = make_params(k_p, Cin, Cout)

    out = unet2d_bridge_forward(x, params)
    out = jax.block_until_ready(out)

    ref = reference_forward(x, params)
    assert out.shape == (B, Cout // 2, 2 * H, 2 * W), out.shape
    assert jnp.allclose(out, ref, rtol=1e-4, atol=1e-4), (
        float(jnp.max(jnp.abs(out - ref))))

    print("KERNEL_OK")
</pallas_src>

<mosaic_0001>
module attributes {stable_mosaic.version = 11 : i64} {
  func.func @_unet_bridge_kernel(%arg0: i32, %arg1: memref<1x16x64xf32, #tpu.memory_space<vmem>>, %arg2: memref<3x64x128xf32, #tpu.memory_space<vmem>>, %arg3: memref<2x128xf32, #tpu.memory_space<vmem>>, %arg4: memref<3x128x128xf32, #tpu.memory_space<vmem>>, %arg5: memref<2x128xf32, #tpu.memory_space<vmem>>, %arg6: memref<128x256xf32, #tpu.memory_space<vmem>>, %arg7: memref<1x128xf32, #tpu.memory_space<vmem>>, %arg8: memref<1x32x128xf32, #tpu.memory_space<vmem>>, %arg9: memref<18x64xf32, #tpu.memory_space<vmem>>, %arg10: memref<18x128xf32, #tpu.memory_space<vmem>>) attributes {dimension_semantics = [#tpu.dimension_semantics<parallel>], iteration_bounds = array<i64: 2>, scalar_prefetch = 0 : i64, scratch_operands = 2 : i64, tpu.core_type = #tpu.core_type<tc>, window_params = [{transform_indices = @transform_0, window_bounds = array<i64: 1, 16, 64>}, {pipeline_mode = #tpu.pipeline_mode<synchronous>, transform_indices = @transform_1, window_bounds = array<i64: 3, 64, 128>}, {pipeline_mode = #tpu.pipeline_mode<synchronous>, transform_indices = @transform_2, window_bounds = array<i64: 2, 128>}, {pipeline_mode = #tpu.pipeline_mode<synchronous>, transform_indices = @transform_3, window_bounds = array<i64: 3, 128, 128>}, {pipeline_mode = #tpu.pipeline_mode<synchronous>, transform_indices = @transform_4, window_bounds = array<i64: 2, 128>}, {pipeline_mode = #tpu.pipeline_mode<synchronous>, transform_indices = @transform_5, window_bounds = array<i64: 128, 256>}, {pipeline_mode = #tpu.pipeline_mode<synchronous>, transform_indices = @transform_6, window_bounds = array<i64: 1, 128>}, {transform_indices = @transform_7, window_bounds = array<i64: 1, 32, 128>}]} {
    %cst = arith.constant 0.000000e+00 : f32
    %0 = vector.broadcast %cst : f32 to vector<18x64xf32>
    %c0 = arith.constant 0 : index
    %c0_0 = arith.constant 0 : index
    %1 = vector.load %arg9[%c0, %c0_0] : memref<18x64xf32, #tpu.memory_space<vmem>>, vector<18x64xf32>
    tpu.vector_store %arg9[%c0, %c0_0], %0 {strides = array<i32>} : memref<18x64xf32, #tpu.memory_space<vmem>>, vector<18x64xf32>,
    %cst_1 = arith.constant 0.000000e+00 : f32
    %2 = vector.broadcast %cst_1 : f32 to vector<18x128xf32>
    %c0_2 = arith.constant 0 : index
    %c0_3 = arith.constant 0 : index
    %3 = vector.load %arg10[%c0_2, %c0_3] : memref<18x128xf32, #tpu.memory_space<vmem>>, vector<18x128xf32>
    tpu.vector_store %arg10[%c0_2, %c0_3], %2 {strides = array<i32>} : memref<18x128xf32, #tpu.memory_space<vmem>>, vector<18x128xf32>,
    %c0_4 = arith.constant 0 : index
    %c0_5 = arith.constant 0 : index
    %c0_6 = arith.constant 0 : index
    %4 = vector.load %arg1[%c0_4, %c0_5, %c0_6] : memref<1x16x64xf32, #tpu.memory_space<vmem>>, vector<1x16x64xf32>
    %5 = vector.shape_cast %4 : vector<1x16x64xf32> to vector<16x64xf32>
    %c1 = arith.constant 1 : index
    %c0_7 = arith.constant 0 : index
    %6 = vector.load %arg9[%c1, %c0_7] : memref<18x64xf32, #tpu.memory_space<vmem>>, vector<16x64xf32>
    tpu.vector_store %arg9[%c1, %c0_7], %5 {strides = array<i32>} : memref<18x64xf32, #tpu.memory_space<vmem>>, vector<16x64xf32>,
    %c0_8 = arith.constant 0 : index
    %c0_9 = arith.constant 0 : index
    %7 = vector.load %arg9[%c0_8, %c0_9] : memref<18x64xf32, #tpu.memory_space<vmem>>, vector<16x64xf32>
    %c0_10 = arith.constant 0 : index
    %c0_11 = arith.constant 0 : index
    %c0_12 = arith.constant 0 : index
    %8 = vector.load %arg2[%c0_10, %c0_11, %c0_12] : memref<3x64x128xf32, #tpu.memory_space<vmem>>, vector<1x64x128xf32>
    %9 = vector.shape_cast %8 : vector<1x64x128xf32> to vector<64x128xf32>
    %cst_13 = arith.constant dense<0.000000e+00> : vector<16x128xf32>
    %10 = tpu.matmul %7, %9, %cst_13 {dimension_numbers = #tpu.dot_dimension_numbers<[1], [0], [0], [1], [0, 0, 1, 1], [], []>} : vector<16x64xf32>, vector<64x128xf32>, vector<16x128xf32> -> vector<16x128xf32>
    %c1_14 = arith.constant 1 : index
    %c0_15 = arith.constant 0 : index
    %11 = vector.load %arg9[%c1_14, %c0_15] : memref<18x64xf32, #tpu.memory_space<vmem>>, vector<16x64xf32>
    %c1_16 = arith.constant 1 : index
    %c0_17 = arith.constant 0 : index
    %c0_18 = arith.constant 0 : index
    %12 = vector.load %arg2[%c1_16, %c0_17, %c0_18] : memref<3x64x128xf32, #tpu.memory_space<vmem>>, vector<1x64x128xf32>
    %13 = vector.shape_cast %12 : vector<1x64x128xf32> to vector<64x128xf32>
    %cst_19 = arith.constant dense<0.000000e+00> : vector<16x128xf32>
    %14 = tpu.matmul %11, %13, %cst_19 {dimension_numbers = #tpu.dot_dimension_numbers<[1], [0], [0], [1], [0, 0, 1, 1], [], []>} : vector<16x64xf32>, vector<64x128xf32>, vector<16x128xf32> -> vector<16x128xf32>
    %15 = arith.addf %10, %14 : vector<16x128xf32>
    %c2 = arith.constant 2 : index
    %c0_20 = arith.constant 0 : index
    %16 = vector.load %arg9[%c2, %c0_20] : memref<18x64xf32, #tpu.memory_space<vmem>>, vector<16x64xf32>
    %c2_21 = arith.constant 2 : index
    %c0_22 = arith.constant 0 : index
    %c0_23 = arith.constant 0 : index
    %17 = vector.load %arg2[%c2_21, %c0_22, %c0_23] : memref<3x64x128xf32, #tpu.memory_space<vmem>>, vector<1x64x128xf32>
    %18 = vector.shape_cast %17 : vector<1x64x128xf32> to vector<64x128xf32>
    %cst_24 = arith.constant dense<0.000000e+00> : vector<16x128xf32>
    %19 = tpu.matmul %16, %18, %cst_24 {dimension_numbers = #tpu.dot_dimension_numbers<[1], [0], [0], [1], [0, 0, 1, 1], [], []>} : vector<16x64xf32>, vector<64x128xf32>, vector<16x128xf32> -> vector<16x128xf32>
    %20 = arith.addf %15, %19 : vector<16x128xf32>
    %c0_25 = arith.constant 0 : index
    %c0_26 = arith.constant 0 : index
    %21 = vector.load %arg3[%c0_25, %c0_26] : memref<2x128xf32, #tpu.memory_space<vmem>>, vector<1x128xf32>
    %22 = vector.broadcast %21 : vector<1x128xf32> to vector<16x128xf32>
    %23 = arith.mulf %20, %22 : vector<16x128xf32>
    %c1_27 = arith.constant 1 : index
    %c0_28 = arith.constant 0 : index
    %24 = vector.load %arg3[%c1_27, %c0_28] : memref<2x128xf32, #tpu.memory_space<vmem>>, vector<1x128xf32>
    %25 = vector.broadcast %24 : vector<1x128xf32> to vector<16x128xf32>
    %26 = arith.addf %23, %25 : vector<16x128xf32>
    %cst_29 = arith.constant 0.000000e+00 : f32
    %27 = vector.broadcast %cst_29 : f32 to vector<16x128xf32>
    %28 = arith.cmpf ogt, %26, %27 : vector<16x128xf32>
    %cst_30 = arith.constant 0.000000e+00 : f32
    %29 = vector.broadcast %cst_30 : f32 to vector<16x128xf32>
    %30 = arith.minimumf %26, %29 : vector<16x128xf32>
    %31 = math.exp %30 : vector<16x128xf32>
    %cst_31 = arith.constant 1.000000e+00 : f32
    %32 = vector.broadcast %cst_31 : f32 to vector<16x128xf32>
    %33 = arith.subf %31, %32 : vector<16x128xf32>
    %34 = arith.select %28, %26, %33 : vector<16x128xi1>, vector<16x128xf32>
    %c1_32 = arith.constant 1 : index
    %c0_33 = arith.constant 0 : index
    %35 = vector.load %arg10[%c1_32, %c0_33] : memref<18x128xf32, #tpu.memory_space<vmem>>, vector<16x128xf32>
    tpu.vector_store %arg10[%c1_32, %c0_33], %34 {strides = array<i32>} : memref<18x128xf32, #tpu.memory_space<vmem>>, vector<16x128xf32>,
    %c0_34 = arith.constant 0 : index
    %c0_35 = arith.constant 0 : index
    %36 = vector.load %arg10[%c0_34, %c0_35] : memref<18x128xf32, #tpu.memory_space<vmem>>, vector<16x128xf32>
    %c0_36 = arith.constant 0 : index
    %c0_37 = arith.constant 0 : index
    %c0_38 = arith.constant 0 : index
    %37 = vector.load %arg4[%c0_36, %c0_37, %c0_38] : memref<3x128x128xf32, #tpu.memory_space<vmem>>, vector<1x128x128xf32>
    %38 = vector.shape_cast %37 : vector<1x128x128xf32> to vector<128x128xf32>
    %cst_39 = arith.constant dense<0.000000e+00> : vector<16x128xf32>
    %39 = tpu.matmul %36, %38, %cst_39 {dimension_numbers = #tpu.dot_dimension_numbers<[1], [0], [0], [1], [0, 0, 1, 1], [], []>} : vector<16x128xf32>, vector<128x128xf32>, vector<16x128xf32> -> vector<16x128xf32>
    %c1_40 = arith.constant 1 : index
    %c0_41 = arith.constant 0 : index
    %40 = vector.load %arg10[%c1_40, %c0_41] : memref<18x128xf32, #tpu.memory_space<vmem>>, vector<16x128xf32>
    %c1_42 = arith.constant 1 : index
    %c0_43 = arith.constant 0 : index
    %c0_44 = arith.constant 0 : index
    %41 = vector.load %arg4[%c1_42, %c0_43, %c0_44] : memref<3x128x128xf32, #tpu.memory_space<vmem>>, vector<1x128x128xf32>
    %42 = vector.shape_cast %41 : vector<1x128x128xf32> to vector<128x128xf32>
    %cst_45 = arith.constant dense<0.000000e+00> : vector<16x128xf32>
    %43 = tpu.matmul %40, %42, %cst_45 {dimension_numbers = #tpu.dot_dimension_numbers<[1], [0], [0], [1], [0, 0, 1, 1], [], []>} : vector<16x128xf32>, vector<128x128xf32>, vector<16x128xf32> -> vector<16x128xf32>
    %44 = arith.addf %39, %43 : vector<16x128xf32>
    %c2_46 = arith.constant 2 : index
    %c0_47 = arith.constant 0 : index
    %45 = vector.load %arg10[%c2_46, %c0_47] : memref<18x128xf32, #tpu.memory_space<vmem>>, vector<16x128xf32>
    %c2_48 = arith.constant 2 : index
    %c0_49 = arith.constant 0 : index
    %c0_50 = arith.constant 0 : index
    %46 = vector.load %arg4[%c2_48, %c0_49, %c0_50] : memref<3x128x128xf32, #tpu.memory_space<vmem>>, vector<1x128x128xf32>
    %47 = vector.shape_cast %46 : vector<1x128x128xf32> to vector<128x128xf32>
    %cst_51 = arith.constant dense<0.000000e+00> : vector<16x128xf32>
    %48 = tpu.matmul %45, %47, %cst_51 {dimension_numbers = #tpu.dot_dimension_numbers<[1], [0], [0], [1], [0, 0, 1, 1], [], []>} : vector<16x128xf32>, vector<128x128xf32>, vector<16x128xf32> -> vector<16x128xf32>
    %49 = arith.addf %44, %48 : vector<16x128xf32>
    %c0_52 = arith.constant 0 : index
    %c0_53 = arith.constant 0 : index
    %50 = vector.load %arg5[%c0_52, %c0_53] : memref<2x128xf32, #tpu.memory_space<vmem>>, vector<1x128xf32>
    %51 = vector.broadcast %50 : vector<1x128xf32> to vector<16x128xf32>
    %52 = arith.mulf %49, %51 : vector<16x128xf32>
    %c1_54 = arith.constant 1 : index
    %c0_55 = arith.constant 0 : index
    %53 = vector.load %arg5[%c1_54, %c0_55] : memref<2x128xf32, #tpu.memory_space<vmem>>, vector<1x128xf32>
    %54 = vector.broadcast %53 : vector<1x128xf32> to vector<16x128xf32>
    %55 = arith.addf %52, %54 : vector<16x128xf32>
    %cst_56 = arith.constant 0.000000e+00 : f32
    %56 = vector.broadcast %cst_56 : f32 to vector<16x128xf32>
    %57 = arith.cmpf ogt, %55, %56 : vector<16x128xf32>
    %cst_57 = arith.constant 0.000000e+00 : f32
    %58 = vector.broadcast %cst_57 : f32 to vector<16x128xf32>
    %59 = arith.minimumf %55, %58 : vector<16x128xf32>
    %60 = math.exp %59 : vector<16x128xf32>
    %cst_58 = arith.constant 1.000000e+00 : f32
    %61 = vector.broadcast %cst_58 : f32 to vector<16x128xf32>
    %62 = arith.subf %60, %61 : vector<16x128xf32>
    %63 = arith.select %57, %55, %62 : vector<16x128xi1>, vector<16x128xf32>
    %c0_59 = arith.constant 0 : index
    %c0_60 = arith.constant 0 : index
    %64 = vector.load %arg6[%c0_59, %c0_60] : memref<128x256xf32, #tpu.memory_space<vmem>>, vector<128x256xf32>
    %cst_61 = arith.constant dense<0.000000e+00> : vector<16x256xf32>
    %65 = tpu.matmul %63, %64, %cst_61 {dimension_numbers = #tpu.dot_dimension_numbers<[1], [0], [0], [1], [0, 0, 1, 1], [], []>} : vector<16x128xf32>, vector<128x256xf32>, vector<16x256xf32> -> vector<16x256xf32>
    %66 = vector.shape_cast %65 : vector<16x256xf32> to vector<32x128xf32>
    %c0_62 = arith.constant 0 : index
    %c0_63 = arith.constant 0 : index
    %67 = vector.load %arg7[%c0_62, %c0_63] : memref<1x128xf32, #tpu.memory_space<vmem>>, vector<1x128xf32>
    %68 = vector.broadcast %67 : vector<1x128xf32> to vector<32x128xf32>
    %69 = arith.addf %66, %68 : vector<32x128xf32>
    %c0_64 = arith.constant 0 : index
    %c0_65 = arith.constant 0 : index
    %c0_66 = arith.constant 0 : index
    %70 = vector.load %arg8[%c0_64, %c0_65, %c0_66] : memref<1x32x128xf32, #tpu.memory_space<vmem>>, vector<1x32x128xf32>
    %71 = vector.shape_cast %70 : vector<1x32x128xf32> to vector<32x128xf32>
    %72 = vector.shape_cast %69 : vector<32x128xf32> to vector<1x32x128xf32>
    tpu.vector_store %arg8[%c0_64, %c0_65, %c0_66], %72 {strides = array<i32>} : memref<1x32x128xf32, #tpu.memory_space<vmem>>, vector<1x32x128xf32>,
    return
  }
  func.func @transform_0(%arg0: i32) -> (i32, i32, i32) {
    %c0_i32 = arith.constant 0 : i32
    %c0_i32_0 = arith.constant 0 : i32
    %c0_i32_1 = arith.constant 0 : i32
    return %arg0, %c0_i32, %c0_i32_0 : i32, i32, i32
  }
  func.func @transform_1(%arg0: i32) -> (i32, i32, i32) {
    %c0_i32 = arith.constant 0 : i32
    %c0_i32_0 = arith.constant 0 : i32
    %c0_i32_1 = arith.constant 0 : i32
    %c0_i32_2 = arith.constant 0 : i32
    return %c0_i32, %c0_i32_0, %c0_i32_1 : i32, i32, i32
  }
  func.func @transform_2(%arg0: i32) -> (i32, i32) {
    %c0_i32 = arith.constant 0 : i32
    %c0_i32_0 = arith.constant 0 : i32
    %c0_i32_1 = arith.constant 0 : i32
    return %c0_i32, %c0_i32_0 : i32, i32
  }
  func.func @transform_3(%arg0: i32) -> (i32, i32, i32) {
    %c0_i32 = arith.constant 0 : i32
    %c0_i32_0 = arith.constant 0 : i32
    %c0_i32_1 = arith.constant 0 : i32
    %c0_i32_2 = arith.constant 0 : i32
    return %c0_i32, %c0_i32_0, %c0_i32_1 : i32, i32, i32
  }
  func.func @transform_4(%arg0: i32) -> (i32, i32) {
    %c0_i32 = arith.constant 0 : i32
    %c0_i32_0 = arith.constant 0 : i32
    %c0_i32_1 = arith.constant 0 : i32
    return %c0_i32, %c0_i32_0 : i32, i32
  }
  func.func @transform_5(%arg0: i32) -> (i32, i32) {
    %c0_i32 = arith.constant 0 : i32
    %c0_i32_0 = arith.constant 0 : i32
    %c0_i32_1 = arith.constant 0 : i32
    return %c0_i32, %c0_i32_0 : i32, i32
  }
  func.func @transform_6(%arg0: i32) -> (i32, i32) {
    %c0_i32 = arith.constant 0 : i32
    %c0_i32_0 = arith.constant 0 : i32
    %c0_i32_1 = arith.constant 0 : i32
    return %c0_i32, %c0_i32_0 : i32, i32
  }
  func.func @transform_7(%arg0: i32) -> (i32, i32, i32) {
    %c0_i32 = arith.constant 0 : i32
    %c0_i32_0 = arith.constant 0 : i32
    %c0_i32_1 = arith.constant 0 : i32
    return %arg0, %c0_i32, %c0_i32_0 : i32, i32, i32
  }
}

</mosaic_0001>

<bundles_post_ra>
// kernel: tpu_custom_call.1
= control target key start
LH: loop header
LB: loop body
LE: loop exit
PB: predicated region body
PF: predicated region fallthrough
CT: control target
= control target key end

     0   :  { %s2099_s0 = inlined_call_operand.hbm [shape: f32[2,16,64], index: 0, kind: input, shape index: {}]   ;;  %s2100_s1 = inlined_call_operand.hbm [shape: f32[3,64,128], index: 1, kind: input, shape index: {}]   ;;  %s2101_s2 = inlined_call_operand.vmem [shape: f32[2,128], index: 2, kind: input, shape index: {}]   ;;  %s2102_s3 = inlined_call_operand.hbm [shape: f32[3,128,128], index: 3, kind: input, shape index: {}]   ;;  %s2103_s4 = inlined_call_operand.vmem [shape: f32[2,128], index: 4, kind: input, shape index: {}]   ;;  %s2104_s5 = inlined_call_operand.hbm [shape: f32[128,256], index: 5, kind: input, shape index: {}]   ;;  %s2105_s6 = inlined_call_operand.vmem [shape: f32[1,128], index: 6, kind: input, shape index: {}]   ;;  %s2106_s7 = inlined_call_operand.hbm [shape: f32[2,32,128], index: 7, kind: output, shape index: {}]  }
   0x1   :  { %2113 = sst [smem:[#allocation17_spill]] %s2100_s1 }
   0x2   :  { %12 = vsyncpa [#allocation5], 0 }
   0x3   :  { %14 = vsyncpa [#allocation5 + $0x1], 0 }
   0x4   :  { %15 = vsyncpa [#allocation8], 0 }
   0x5   :  { %16 = vsyncpa [#allocation11], 0 }
   0x6   :  { %17 = vsyncpa [#allocation6], 0 }
   0x7   :  { %19 = vsyncpa [#allocation6 + $0x1], 0  ;;  %s1856_s24 = smov 0   ;;  %s1858_s25 = smov 0  }
   0x8   :  { %s1860_s26 = smov 0   ;;  %s1862_s27 = smov 0  }
   0x9 LB: > { %s1877_s28 = sadd.s32 4294967295, %s1801_s27   ;;  %s1247_s29 = sadd.s32 4294967294, %s1801_s27   ;;  %s1801_s27 = sphi %s1862_s27, %s2135_s27   ;;  %s1797_s26 = sphi %s1860_s26, %s2134_s26   ;;  %s1793_s25 = sphi %s1858_s25, %s2133_s25   ;;  %s1789_s24 = sphi %s1856_s24, %s2132_s24  }
   0xa   : > { %p45_p0 = scmp.ne.s32.totalorder %s1793_s25, %s1789_s24  ;;  %p2107_p1 = scmp.eq.s32.totalorder %s1877_s28, 0 }
   0xb   : > { %p195_p2 = scmp.eq.s32.totalorder %s1877_s28, 1  ;;  %p201_p3 = scmp.eq.s32.totalorder %s1247_s29, 1 }
   0xc   : > { %p1886_p4 = por %p2107_p1, %p45_p0  ;;  %p1248_p5 = scmp.ge.s32.totalorder %s1801_s27, 1 }
   0xd   : > { %p1891_p6 = por %p201_p3, %p45_p0  ;;  %p208_p7 = scmp.lt.s32.totalorder %s1801_s27, 3 }
   0xe   : > { %s2114_s30 = scalar_select %p1886_p4, 1, 0 }
   0xf   : > { %s2115_s8 = scalar_select %p1891_p6, 1, 0 }
  0x10   : > { %p1896_p8 = pnand %p1248_p5, %p208_p7  ;;  %s1803_s10 = smov [#allocation7]  }
  0x11   : > { %s220_s11 = sshll.u32 %s1803_s10, 4  ;;  %s1804_s13 = smov [#allocation9]   ;;  %s221_s11 = int_to_ptr.vmem [resolvable:$true] %s220_s11 }
  0x12   : > { %s2116_s9 = scalar_select %p1896_p8, 1, 0 }
  0x13   : > { %p1546_p9 = pneg %p1896_p8  ;;  %s236_s14 = sshll.u32 %s1804_s13, 4  ;;  %s237_s14 = int_to_ptr.vmem [resolvable:$true] %s236_s14 }
  0x14   : > { %s1805_s15 = smov [#allocation10]   ;;  %s1634_s17 = scalar_lea.vmem %s221_s11, 3072 }
  0x15   : > { %p1905_p11 = pnand %p1546_p9, %p2107_p1  ;;  %s252_s16 = sshll.u32 %s1805_s15, 4  ;;  %s253_s16 = int_to_ptr.vmem [resolvable:$true] %s252_s16 }
  0x16   : > { %p1635_p13 = scmp.ne.s32.totalorder %s221_s11, %s1634_s17  ;;  %p1642_p5 = scmp.lt.s32.totalorder %s221_s11, %s221_s11 }
  0x17   : > { %p1625_p12 = pneg %p1905_p11  ;;  %p1643_p7 = scmp.lt.s32.totalorder %s1634_s17, %s1634_s17 }
  0x19   : > { %p1637_p0 = pnand %p1635_p13, %p1625_p12  ;;  %p1644_p9 = por %p1643_p7, %p1642_p5 }
  0x1b   : > { %p1638_p3 = pneg %p1637_p0 }
  0x1d   : > { %p1645_p10 = pnand %p1644_p9, %p1638_p3 }
  0x1f   : > { %1648 = shalt.err (!%p1645_p10)
}
  0x20   : > { %s2108_s18 = smov 128   ;;  %s2109_s19 = smov 8  }
  0x21   : > { %s2118_s1 = sld [smem:[#allocation17_spill]]  ;;  %s1660_s22 = scalar_lea.vmem %s237_s14, 6144 }
  0x22   : > { %p1661_p13 = scmp.ne.s32.totalorder %s237_s14, %s1660_s22  ;;  %p1668_p3 = scmp.lt.s32.totalorder %s237_s14, %s237_s14 }
  0x23   : > { %p1669_p10 = scmp.lt.s32.totalorder %s1660_s22, %s1660_s22 }
  0x24   : > { %p1663_p0 = pnand %p1661_p13, %p1625_p12 }
  0x25   : > { %p1670_p7 = por %p1669_p10, %p1668_p3 }
  0x26   : > { %p1664_p5 = pneg %p1663_p0 }
  0x27   : > { %1549 = dma.hbm_to_vmem [thread:$0]  (!%p1905_p11), %s2118_s1, 3072, %s221_s11, [#allocation8], %s2108_s18, %s2108_s18, %s2109_s19  }
  0x28   : > { %p1671_p9 = pnand %p1670_p7, %p1664_p5 }
  0x2a   : > { %1674 = shalt.err (!%p1671_p9)
}
  0x2b   : > { %1552 = dma.hbm_to_vmem [thread:$0]  (!%p1905_p11), %s2102_s3, 6144, %s237_s14, [#allocation8], %s2108_s18, %s2108_s18, %s2109_s19  }
  0x2c   : > { %s1686_s10 = scalar_lea.vmem %s253_s16, 4096  ;;  %p1694_p3 = scmp.lt.s32.totalorder %s253_s16, %s253_s16 }
  0x2d   : > { %p1687_p1 = scmp.ne.s32.totalorder %s253_s16, %s1686_s10  ;;  %p1695_p5 = scmp.lt.s32.totalorder %s1686_s10, %s1686_s10 }
  0x2f   : > { %p1689_p13 = pnand %p1687_p1, %p1625_p12  ;;  %p1696_p10 = por %p1695_p5, %p1694_p3 }
  0x31   : > { %p1690_p0 = pneg %p1689_p13 }
  0x33   : > { %p1697_p7 = pnand %p1696_p10, %p1690_p0 }
  0x35   : > { %1700 = shalt.err (!%p1697_p7)
}
  0x36   : > { %s1808_s11 = smov 256   ;;  %s1809_s13 = smov 16  }
  0x37   : > { %1555 = dma.hbm_to_vmem [thread:$0]  (!%p1905_p11), %s2104_s5, 4096, %s253_s16, [#allocation11], %s1808_s11, %s1808_s11, %s1809_s13  }
  0x38   : > { %s1942_s17 = sadd.s32 1, %s1801_s27   ;;  %s32_s21 = sadd.s32 1, %s1797_s26 }
  0x39   : > { %s29_s20 = ssub.s32 %s1801_s27, %s1942_s17  ;;  %p39_p12 = scmp.ne.s32.totalorder %s1797_s26, %s1793_s25 }
  0x3a   : > { %p30_p1 = scmp.eq.s32.totalorder %s29_s20, 0  ;;  %p40_p9 = scmp.eq.s32.totalorder %s1801_s27, 0 }
  0x3b   : > { %p1567_p13 = scmp.lt.s32.totalorder %s1801_s27, 2  ;;  %p1956_p3 = por %p195_p2, %p39_p12 }
  0x3c   : > { %s1952_s22 = scalar_select %p30_p1, %s1797_s26, %s32_s21  }
  0x3d   : > { %p41_p0 = por %p40_p9, %p39_p12  ;;  %s269_s12 = sand.u32 1, %s1797_s26  }
  0x3e   : > { %s2119_s23 = scalar_select %p1956_p3, 1, 0 }
  0x3f   : > { %s1282_s29 = sshll.u32 %s1801_s27, 8  ;;  %s1253_s16 = sshll.u32 %s269_s12, 4 }
  0x40   : > { %s1965_s13 = scalar_lea.hbm %s2099_s0, %s1282_s29  ;;  %s273_s14 = scalar_lea.vmem [#allocation4], %s1253_s16 }
  0x41   : > { %s280_s15 = sshll.u32 %s273_s14, 4  ;;  %p1967_p11 = pnand %p1567_p13, %p41_p0  ;;  %s1971_s15 = int_to_ptr.vmem [resolvable:$true] %s280_s15 }
  0x42   : > { %s1973_s21 = scalar_lea.sflag [#allocation5], %s269_s12  ;;  %s1701_s18 = scalar_lea.hbm %s1965_s13, 256 }
  0x43   : > { %p1702_p2 = scmp.ne.s32.totalorder %s1965_s13, %s1701_s18  ;;  %p1703_p5 = pneg %p1967_p11 }
  0x44   : > { %s1706_s16 = scalar_lea.hbm %s2099_s0, 512  ;;  %p1707_p1 = scmp.lt.s32.totalorder %s1965_s13, %s2099_s0 }
  0x45   : > { %p1704_p10 = pnand %p1703_p5, %p1702_p2  ;;  %p1708_p12 = scmp.lt.s32.totalorder %s1706_s16, %s1701_s18 }
  0x47   : > { %p1705_p7 = pneg %p1704_p10  ;;  %p1709_p9 = por %p1708_p12, %p1707_p1 }
  0x49   : > { %p1710_p13 = pnand %p1709_p9, %p1705_p7 }
  0x4b   : > { %1713 = shalt.err (!%p1710_p13)
}
  0x4c   : > { %s1714_s12 = scalar_lea.vmem %s1971_s15, 256  ;;  %s1810_s19 = smov [#allocation4]  }
  0x4d   : > { %p1715_p0 = scmp.ne.s32.totalorder %s1971_s15, %s1714_s12  ;;  %s1719_s1 = sshll.u32 %s1810_s19, 4  ;;  %s1720_s1 = int_to_ptr.vmem [resolvable:$false] %s1719_s1 }
  0x4e   : > { %s1721_s29 = scalar_lea.vmem %s1720_s1, 512  ;;  %p1722_p10 = scmp.lt.s32.totalorder %s1971_s15, %s1720_s1 }
  0x4f   : > { %p1717_p6 = pnand %p1715_p0, %p1703_p5  ;;  %p1723_p3 = scmp.lt.s32.totalorder %s1721_s29, %s1714_s12 }
  0x51   : > { %p1718_p2 = pneg %p1717_p6  ;;  %p1724_p4 = por %p1723_p3, %p1722_p10 }
  0x53   : > { %p1725_p8 = pnand %p1724_p4, %p1718_p2 }
  0x55   : > { %1728 = shalt.err (!%p1725_p8)
}
  0x56   : > { %s2121_s18 = smov 8   ;;  %s2122_s10 = smov 128  }
  0x57   : > { %1559 = dma.hbm_to_vmem [thread:$0]  (!%p1967_p11), %s1965_s13, 256, %s1971_s15, %s1973_s21, %s2122_s10, %s2122_s10, %s2121_s18  }
  0x58   : > { %p2123_p6 = scmp.ne.s32.totalorder %s2116_s9, 0 }
  0x59   : > { %s2000_s19 = sand.u32 (!%p2123_p6), 1, %s1793_s25   ;;  %p2124_p4 = scmp.ne.s32.totalorder (!%p2123_p6), %s2114_s30, 0 }
  0x5a   : > { %292 = sbr.rel (%p2123_p6) target bundleno = 835 (0x343), region = 48  ;;  %s1257_s1 = sshll.u32 (!%p2123_p6), %s2000_s19, 4 }
  0x5b   : > { %s295_s16 = scalar_lea.sflag (!%p2123_p6), [#allocation5], %s2000_s19  ;;  %s298_s11 = scalar_lea.vmem (!%p2123_p6), [#allocation4], %s1257_s1 }
  0x5f   : > { %1772 = dma.done.wait (%p2124_p4), %s295_s16, 256  }
  0x60   : > { %1774 = vsyncadd (%p2124_p4), %s295_s16, 4294967040  ;;  %p2125_p8 = scmp.eq.s32.totalorder %s1877_s28, 0 }
  0x62   : > { %1776 = dma.done.wait (%p2125_p8), [#allocation8], 9216   ;;  %p2126_p3 = pmov %p2125_p8 }
  0x64   : > { %1778 = vsyncadd (%p2126_p3), [#allocation8], 4294958080  ;;  %p2127_p11 = pmov %p2126_p3 }
  0x65   : > { %p2128_p5 = pmov %p2126_p3 }
  0x66   : > { %1780 = dma.done.wait (%p2127_p11), [#allocation11], 4096  }
  0x67   : > { %1782 = vsyncadd (%p2128_p5), [#allocation11], 4294963200  ;;  %vm341_vm0 = vcmask 523264   ;;  %vm344_vm1 = vcmask 517120   ;;  %v1811_v0 = vmov 0.0   ;;  %v373_v1 = vld [vmem:[#allocation7 + $0x78] sm:$0xff] }
  0x68   : > { %342 = vst.msk [vmem:[#allocation2] sm:$0xff] %vm341_vm0, %v1811_v0  ;;  %343 = vst.msk [vmem:[#allocation2 + $0x8] sm:$0xff] %vm341_vm0, %v1811_v0  ;;  %v372_v2 = vld [vmem:[#allocation7 + $0x70] sm:$0xff]  ;;  %1368 = vmatprep.subr.mxu1 %v373_v1  ;;  %v371_v3 = vld [vmem:[#allocation7 + $0x68] sm:$0xff]  ;;  %s1261_s29 = sshll.u32 %s2000_s19, 5  ;;  %s1132_s15 = scalar_lea.sflag [#allocation6], %s2000_s19 }
  0x69   : > { %346 = vst [vmem:[#allocation3] sm:$0xff] %v1811_v0  ;;  %347 = vst [vmem:[#allocation3 + $0x8] sm:$0xff] %v1811_v0  ;;  %1369 = vmatpush3.msra.mxu1 %v373_v1  ;;  %v349_v4 = vld [vmem:[%s298_s11] sm:$0xff]  ;;  %v350_v5 = vld [vmem:[%s298_s11 + $0x8] sm:$0xff]  ;;  %s340_s1 = scalar_lea.vmem [#allocation12], %s1261_s29  ;;  %s1283_s11 = sshll.u32 %s1877_s28, 9 }
  0x6a   : > { %348 = vst [vmem:[#allocation3 + $0x10] sm:$0x3] %v1811_v0  ;;  %345 = vst.msk [vmem:[#allocation2 + $0x10] sm:$0x3] %vm344_vm1, %v1811_v0  ;;  %1370 = vmatprep.subr.mxu1 %v372_v2  ;;  %v546_v6 = vld [vmem:[#allocation7 + $0xb8] sm:$0xff]  ;;  %v370_v7 = vld [vmem:[#allocation7 + $0x60] sm:$0xff]  ;;  %s2056_s13 = scalar_lea.hbm %s2106_s7, %s1283_s11 }
  0x6b   : > { %351 = vst.msk [vmem:[#allocation2 + $0x1] sm:$0xff] %vm341_vm0, %v349_v4  ;;  %1371 = vmatpush3.msra.mxu1 %v372_v2  ;;  %352 = vst.msk [vmem:[#allocation2 + $0x9] sm:$0xff] %vm341_vm0, %v350_v5  ;;  %1406 = vmatprep.subr.mxu0 %v546_v6  ;;  %v545_v8 = vld [vmem:[#allocation7 + $0xb0] sm:$0xff]  ;;  %v544_v9 = vld [vmem:[#allocation7 + $0xa8] sm:$0xff]  ;;  %s1145_s16 = sshll.u32 %s340_s1, 4  ;;  %p2129_p1 = scmp.ne.s32.totalorder %s2119_s23, 0  ;;  %s2051_s16 = int_to_ptr.vmem [resolvable:$true] %s1145_s16 }
  0x6c   : > { %1372 = vmatprep.subr.mxu1 %v371_v3  ;;  %1407 = vmatpush3.msra.mxu0 %v546_v6  ;;  %v369_v10 = vld [vmem:[#allocation7 + $0x58] sm:$0xff]  ;;  %v543_v11 = vld [vmem:[#allocation7 + $0xa0] sm:$0xff]  ;;  %v368_v12 = vld [vmem:[#allocation7 + $0x50] sm:$0xff]  ;;  %s1729_s28 = scalar_lea.vmem %s2051_s16, 512  ;;  %s1813_s20 = smov [#allocation12]  }
  0x6d   : > { %1373 = vmatpush3.msra.mxu1 %v371_v3  ;;  %1408 = vmatprep.subr.mxu0 %v545_v8  ;;  %v367_v13 = vld [vmem:[#allocation7 + $0x48] sm:$0xff]  ;;  %v542_v15 = vld [vmem:[#allocation7 + $0x98] sm:$0xff]  ;;  %v366_v16 = vld [vmem:[#allocation7 + $0x40] sm:$0xff]  ;;  %p1730_p7 = scmp.ne.s32.totalorder %s2051_s16, %s1729_s28  ;;  %s1733_s21 = sshll.u32 %s1813_s20, 4  ;;  %s1734_s21 = int_to_ptr.vmem [resolvable:$false] %s1733_s21 }
  0x6e   : > { %1374 = vmatprep.subr.mxu1 %v370_v7  ;;  %1409 = vmatpush3.msra.mxu0 %v545_v8  ;;  %v541_v17 = vld [vmem:[#allocation7 + $0x90] sm:$0xff]  ;;  %v362_v19 = vld [vmem:[#allocation7 + $0x38] sm:$0xff]  ;;  %v540_v20 = vld [vmem:[#allocation7 + $0x88] sm:$0xff]  ;;  %s1735_s14 = scalar_lea.vmem %s1734_s21, 1024  ;;  %p1736_p13 = scmp.lt.s32.totalorder %s2051_s16, %s1734_s21 }
  0x6f   : > { %1375 = vmatpush3.msra.mxu1 %v370_v7  ;;  %1410 = vmatprep.subr.mxu0 %v544_v9  ;;  %v361_v21 = vld [vmem:[#allocation7 + $0x30] sm:$0xff]  ;;  %v539_v22 = vld [vmem:[#allocation7 + $0x80] sm:$0xff]  ;;  %v360_v23 = vld [vmem:[#allocation7 + $0x28] sm:$0xff]  ;;  %p1731_p12 = pnand %p1730_p7, %p2129_p1  ;;  %p1737_p0 = scmp.lt.s32.totalorder %s1735_s14, %s1729_s28 }
  0x70   : > { %1376 = vmatprep.subr.mxu1 %v369_v10  ;;  %1411 = vmatpush3.msra.mxu0 %v544_v9  ;;  %v359_v25 = vld [vmem:[#allocation7 + $0x20] sm:$0xff]  ;;  %v358_v28 = vld [vmem:[#allocation7 + $0x18] sm:$0xff]  ;;  %v357_v29 = vld [vmem:[#allocation7 + $0x10] sm:$0xff] }
  0x71   : > { %1377 = vmatpush3.msra.mxu1 %v369_v10  ;;  %1412 = vmatprep.subr.mxu0 %v543_v11  ;;  %v356_v30 = vld [vmem:[#allocation7 + $0x8] sm:$0xff]  ;;  %v355_v31 = vld [vmem:[#allocation7] sm:$0xff]  ;;  %v694_v33 = vld [vmem:[#allocation9 + $0xf8] sm:$0xff]  ;;  %p1732_p9 = pneg %p1731_p12  ;;  %p1738_p2 = por %p1737_p0, %p1736_p13 }
  0x72   : > { %v363_v14 = vld [vmem:[#allocation2 + $0x1] sm:$0xff]  ;;  %1378 = vmatprep.subr.mxu1 %v368_v12  ;;  %1413 = vmatpush3.msra.mxu0 %v543_v11  ;;  %v364_v18 = vld [vmem:[#allocation2 + $0x9] sm:$0xff]  ;;  %v692_v35 = vld [vmem:[#allocation9 + $0xe8] sm:$0xff] }
  0x73   : > { %1384 = vmatprep.mubr.msk.f32.mxu1 %vm341_vm0, %v363_v14  ;;  %1379 = vmatpush3.msra.mxu1 %v368_v12  ;;  %v353_v24 = vld [vmem:[#allocation2] sm:$0xff]  ;;  %v537_v27 = vld [vmem:[#allocation2 + $0xa] sm:$0xff]  ;;  %v688_v41 = vld [vmem:[#allocation9 + $0xc8] sm:$0xff]  ;;  %p1739_p10 = pnand %p1738_p2, %p1732_p9 }
  0x74   : > { %1380 = vmatprep.subr.mxu1 %v367_v13  ;;  %1414 = vmatprep.subr.mxu0 %v542_v15  ;;  %v536_v26 = vld [vmem:[#allocation2 + $0x2] sm:$0xff]  ;;  %v691_v36 = vld [vmem:[#allocation9 + $0xe0] sm:$0xff]  ;;  %v673_v42 = vld [vmem:[#allocation9 + $0x68] sm:$0xff] }
  0x75   : > { %1381 = vmatpush3.msra.mxu1 %v367_v13  ;;  %1415 = vmatpush3.msra.mxu0 %v542_v15  ;;  %v354_v32 = vld [vmem:[#allocation2 + $0x8] sm:$0xff]  ;;  %v693_v34 = vld [vmem:[#allocation9 + $0xf0] sm:$0xff]  ;;  %v687_v43 = vld [vmem:[#allocation9 + $0xc0] sm:$0xff] }
  0x76   : > { %1382 = vmatprep.subr.mxu1 %v366_v16  ;;  %1416 = vmatprep.subr.mxu0 %v541_v17  ;;  %v690_v37 = vld [vmem:[#allocation9 + $0xd8] sm:$0xff]  ;;  %v689_v39 = vld [vmem:[#allocation9 + $0xd0] sm:$0xff]  ;;  %v672_v44 = vld [vmem:[#allocation9 + $0x60] sm:$0xff] }
  0x77   : > { %1383 = vmatpush3.msra.mxu1 %v366_v16  ;;  %1417 = vmatpush3.msra.mxu0 %v541_v17  ;;  %v675_v38 = vld [vmem:[#allocation9 + $0x78] sm:$0xff]  ;;  %v674_v40 = vld [vmem:[#allocation9 + $0x70] sm:$0xff]  ;;  %v684_v49 = vld [vmem:[#allocation9 + $0xa8] sm:$0xff] }
  0x78   : > { %1385 = vmatmul.mubr.msk.f32.vlgmr.msra.gmra.mxu1 %vm341_vm0, %v364_v18  ;;  %1387 = vmatprep.subr.mxu1 %v362_v19  ;;  %v686_v45 = vld [vmem:[#allocation9 + $0xb8] sm:$0xff]  ;;  %v685_v47 = vld [vmem:[#allocation9 + $0xb0] sm:$0xff]  ;;  %v669_v50 = vld [vmem:[#allocation9 + $0x48] sm:$0xff] }
  0x79   : > { %1388 = vmatpush3.msra.mxu1 %v362_v19  ;;  %1418 = vmatprep.subr.mxu0 %v540_v20  ;;  %v671_v46 = vld [vmem:[#allocation9 + $0x58] sm:$0xff]  ;;  %v670_v48 = vld [vmem:[#allocation9 + $0x50] sm:$0xff]  ;;  %v683_v51 = vld [vmem:[#allocation9 + $0xa0] sm:$0xff] }
  0x7a   : > { %1389 = vmatprep.subr.mxu1 %v361_v21  ;;  %1419 = vmatpush3.msra.mxu0 %v540_v20  ;;  %v668_v52 = vld [vmem:[#allocation9 + $0x40] sm:$0xff]  ;;  %v682_v53 = vld [vmem:[#allocation9 + $0x98] sm:$0xff]  ;;  %v681_v55 = vld [vmem:[#allocation9 + $0x90] sm:$0xff] }
  0x7b   : > { %1390 = vmatpush3.msra.mxu1 %v361_v21  ;;  %1420 = vmatprep.subr.mxu0 %v539_v22  ;;  %v667_v54 = vld [vmem:[#allocation9 + $0x38] sm:$0xff]  ;;  %v666_v56 = vld [vmem:[#allocation9 + $0x30] sm:$0xff]  ;;  %v680_v57 = vld [vmem:[#allocation9 + $0x88] sm:$0xff] }
  0x7c   : > { %1391 = vmatprep.subr.mxu1 %v360_v23  ;;  %1403 = vmatprep.mubr.msk.f32.mxu1 %vm341_vm0, %v353_v24  ;;  %v665_v58 = vld [vmem:[#allocation9 + $0x28] sm:$0xff]  ;;  %v679_v59 = vld [vmem:[#allocation9 + $0x80] sm:$0xff]  ;;  %v863_v61 = vld [vmem:[#allocation9 + $0x178] sm:$0xff] }
  0x7d   : > { %1392 = vmatpush3.msra.mxu1 %v360_v23  ;;  %1421 = vmatpush3.msra.mxu0 %v539_v22  ;;  %v664_v60 = vld [vmem:[#allocation9 + $0x20] sm:$0xff]  ;;  %v663_v62 = vld [vmem:[#allocation9 + $0x18] sm:$0xff]  ;;  %v662_v63 = vld [vmem:[#allocation9 + $0x10] sm:$0xff] }
  0x7e   : > { %1393 = vmatprep.subr.mxu1 %v359_v25  ;;  %1422 = vmatprep.mubr.msk.f32.mxu0 %vm341_vm0, %v536_v26  ;;  %v661_v1 = vld [vmem:[#allocation9 + $0x8] sm:$0xff]  ;;  %v660_v2 = vld [vmem:[#allocation9] sm:$0xff]  ;;  %v1268_v8 = vld [vmem:[%s2101_s2] ss:$0 sm:$0xff] }
  0x7f   : > { %1394 = vmatpush3.msra.mxu1 %v359_v25  ;;  %1423 = vmatmul.mubr.msk.f32.vlgmr.msra.gmra.mxu0 %vm341_vm0, %v537_v27  ;;  %v1269_v12 = vld [vmem:[%s2101_s2 + $0x1] ss:$0 sm:$0xff] }
  0x80   : > { %1395 = vmatprep.subr.mxu1 %v358_v28  ;;  %1460 = vmatprep.subr.mxu0 %v675_v38 }
  0x81   : > { %1396 = vmatpush3.msra.mxu1 %v358_v28  ;;  %1461 = vmatpush3.msra.mxu0 %v675_v38  ;;  %v856_v38 = vld [vmem:[#allocation9 + $0x140] sm:$0xff] }
  0x82   : > { %1397 = vmatprep.subr.mxu1 %v357_v29  ;;  %1462 = vmatprep.subr.mxu0 %v674_v40 }
  0x83   : > { %1398 = vmatpush3.msra.mxu1 %v357_v29  ;;  %1463 = vmatpush3.msra.mxu0 %v674_v40  ;;  %v862_v29 = vld [vmem:[#allocation9 + $0x170] sm:$0xff] }
  0x84   : > { %1399 = vmatprep.subr.mxu1 %v356_v30  ;;  %1464 = vmatprep.subr.mxu0 %v673_v42  ;;  %v854_v40 = vld [vmem:[#allocation9 + $0x130] sm:$0xff] }
  0x85   : > { %1400 = vmatpush3.msra.mxu1 %v356_v30  ;;  %1465 = vmatpush3.msra.mxu0 %v673_v42  ;;  %v861_v30 = vld [vmem:[#allocation9 + $0x168] sm:$0xff]  ;;  %v852_v42 = vld [vmem:[#allocation9 + $0x120] sm:$0xff] }
  0x86   : > { %1401 = vmatprep.subr.mxu1 %v355_v31  ;;  %1466 = vmatprep.subr.mxu0 %v672_v44 }
  0x87   : > { %1402 = vmatpush3.msra.mxu1 %v355_v31  ;;  %1467 = vmatpush3.msra.mxu0 %v672_v44  ;;  %v860_v31 = vld [vmem:[#allocation9 + $0x160] sm:$0xff]  ;;  %v850_v44 = vld [vmem:[#allocation9 + $0x110] sm:$0xff] }
  0x88   : > { %1404 = vmatmul.mubr.msk.f32.vlgmr.msra.gmra.mxu1 %vm341_vm0, %v354_v32  ;;  %1425 = vmatprep.subr.mxu1 %v694_v33  ;;  %v859_v32 = vld [vmem:[#allocation9 + $0x158] sm:$0xff] }
  0x89   : > { %1426 = vmatpush3.msra.mxu1 %v694_v33  ;;  %1468 = vmatprep.subr.mxu0 %v671_v46 }
  0x8a   : > { %1427 = vmatprep.subr.mxu1 %v693_v34  ;;  %1469 = vmatpush3.msra.mxu0 %v671_v46  ;;  %v848_v46 = vld [vmem:[#allocation9 + $0x100] sm:$0xff] }
  0x8b   : > { %1428 = vmatpush3.msra.mxu1 %v693_v34  ;;  %1470 = vmatprep.subr.mxu0 %v670_v48 }
  0x8c   : > { %1429 = vmatprep.subr.mxu1 %v692_v35  ;;  %1471 = vmatpush3.msra.mxu0 %v670_v48  ;;  %v998_v48 = vld [vmem:[#allocation10 + $0xf8] sm:$0xff] }
  0x8d   : > { %1430 = vmatpush3.msra.mxu1 %v692_v35  ;;  %1472 = vmatprep.subr.mxu0 %v669_v50 }
  0x8e   : > { %1431 = vmatprep.subr.mxu1 %v691_v36  ;;  %1473 = vmatpush3.msra.mxu0 %v669_v50  ;;  %v996_v50 = vld [vmem:[#allocation10 + $0xe8] sm:$0xff] }
  0x8f   : > { %1432 = vmatpush3.msra.mxu1 %v691_v36  ;;  %1474 = vmatprep.subr.mxu0 %v668_v52  ;;  %v858_v36 = vld [vmem:[#allocation9 + $0x150] sm:$0xff] }
  0x90   : > { %1433 = vmatprep.subr.mxu1 %v690_v37  ;;  %1475 = vmatpush3.msra.mxu0 %v668_v52  ;;  %v994_v52 = vld [vmem:[#allocation10 + $0xd8] sm:$0xff] }
  0x91   : > { %1434 = vmatpush3.msra.mxu1 %v690_v37  ;;  %1476 = vmatprep.subr.mxu0 %v667_v54  ;;  %v857_v37 = vld [vmem:[#allocation9 + $0x148] sm:$0xff] }
  0x92   : > { %1435 = vmatprep.subr.mxu1 %v689_v39  ;;  %1477 = vmatpush3.msra.mxu0 %v667_v54  ;;  %v992_v54 = vld [vmem:[#allocation10 + $0xc8] sm:$0xff] }
  0x93   : > { %1436 = vmatpush3.msra.mxu1 %v689_v39  ;;  %1478 = vmatprep.subr.mxu0 %v666_v56  ;;  %v855_v39 = vld [vmem:[#allocation9 + $0x138] sm:$0xff] }
  0x94   : > { %1437 = vmatprep.subr.mxu1 %v688_v41  ;;  %1479 = vmatpush3.msra.mxu0 %v666_v56  ;;  %v990_v56 = vld [vmem:[#allocation10 + $0xb8] sm:$0xff] }
  0x95   : > { %1438 = vmatpush3.msra.mxu1 %v688_v41  ;;  %1480 = vmatprep.subr.mxu0 %v665_v58  ;;  %v853_v41 = vld [vmem:[#allocation9 + $0x128] sm:$0xff] }
  0x96   : > { %1439 = vmatprep.subr.mxu1 %v687_v43  ;;  %1481 = vmatpush3.msra.mxu0 %v665_v58  ;;  %v988_v58 = vld [vmem:[#allocation10 + $0xa8] sm:$0xff] }
  0x97   : > { %1440 = vmatpush3.msra.mxu1 %v687_v43  ;;  %1482 = vmatprep.subr.mxu0 %v664_v60  ;;  %v851_v43 = vld [vmem:[#allocation9 + $0x118] sm:$0xff] }
  0x98   : > { %1441 = vmatprep.subr.mxu1 %v686_v45  ;;  %1483 = vmatpush3.msra.mxu0 %v664_v60  ;;  %v986_v60 = vld [vmem:[#allocation10 + $0x98] sm:$0xff] }
  0x99   : > { %1442 = vmatpush3.msra.mxu1 %v686_v45  ;;  %1484 = vmatprep.subr.mxu0 %v663_v62  ;;  %v849_v45 = vld [vmem:[#allocation9 + $0x108] sm:$0xff] }
  0x9a   : > { %1443 = vmatprep.subr.mxu1 %v685_v47  ;;  %1485 = vmatpush3.msra.mxu0 %v663_v62  ;;  %v984_v62 = vld [vmem:[#allocation10 + $0x88] sm:$0xff] }
  0x9b   : > { %1444 = vmatpush3.msra.mxu1 %v685_v47  ;;  %1486 = vmatprep.subr.mxu0 %v662_v63 }
  0x9c   : > { %1445 = vmatprep.subr.mxu1 %v684_v49  ;;  %1487 = vmatpush3.msra.mxu0 %v662_v63  ;;  %v983_v63 = vld [vmem:[#allocation10 + $0x80] sm:$0xff] }
  0x9d   : > { %1446 = vmatpush3.msra.mxu1 %v684_v49  ;;  %1488 = vmatprep.subr.mxu0 %v661_v1  ;;  %v997_v49 = vld [vmem:[#allocation10 + $0xf0] sm:$0xff] }
  0x9e   : > { %1447 = vmatprep.subr.mxu1 %v683_v51  ;;  %1489 = vmatpush3.msra.mxu0 %v661_v1  ;;  %v982_v1 = vld [vmem:[#allocation10 + $0x78] sm:$0xff] }
  0x9f   : > { %1448 = vmatpush3.msra.mxu1 %v683_v51  ;;  %1490 = vmatprep.subr.mxu0 %v660_v2  ;;  %v995_v51 = vld [vmem:[#allocation10 + $0xe0] sm:$0xff] }
  0xa0   : > { %1449 = vmatprep.subr.mxu1 %v682_v53  ;;  %1491 = vmatpush3.msra.mxu0 %v660_v2  ;;  %v981_v2 = vld [vmem:[#allocation10 + $0x70] sm:$0xff] }
  0xa1   : > { %1450 = vmatpush3.msra.mxu1 %v682_v53  ;;  %999 = vmatprep.subr.mxu0 %v998_v48  ;;  %v993_v53 = vld [vmem:[#allocation10 + $0xd0] sm:$0xff] }
  0xa2   : > { %1451 = vmatprep.subr.mxu1 %v681_v55 }
  0xa3   : > { %1452 = vmatpush3.msra.mxu1 %v681_v55  ;;  %v991_v55 = vld [vmem:[#allocation10 + $0xc0] sm:$0xff] }
  0xa4   : > { %1453 = vmatprep.subr.mxu1 %v680_v57 }
  0xa5   : > { %1454 = vmatpush3.msra.mxu1 %v680_v57  ;;  %v989_v57 = vld [vmem:[#allocation10 + $0xb0] sm:$0xff] }
  0xa6   : > { %1455 = vmatprep.subr.mxu1 %v679_v59 }
  0xa7   : > { %1456 = vmatpush3.msra.mxu1 %v679_v59  ;;  %v987_v59 = vld [vmem:[#allocation10 + $0xa0] sm:$0xff] }
  0xa8   : > { %1495 = vmatprep.subr.mxu1 %v863_v61 }
 0x138   : > { %v1386_v3 = vpop.f32.mrf.mxu1 }
 0x13a   : > { %v446_v4 = vpop.f32.mrf.mxu1 }
 0x13f   : > { %v1424_v6 = vpop.f32.mrf.mxu0 }
 0x141   : > { %v619_v13 = vpop.f32.mrf.mxu0 }
 0x148   : > { %v1405_v5 = vpop.f32.mrf.mxu1 }
 0x149   : > { %v533_v7 = vadd.f32 %v1405_v5, %v1386_v3  ;;  %v980_v3 = vld [vmem:[#allocation10 + $0x68] sm:$0xff]  ;;  %v978_v5 = vld [vmem:[#allocation10 + $0x58] sm:$0xff] }
 0x14a   : > { %v527_v9 = vpop.f32.mrf.mxu1 }
 0x14b   : > { %v629_v10 = vadd.f32 %v1424_v6, %v533_v7  ;;  %v528_v11 = vadd.f32 %v527_v9, %v446_v4  ;;  %v979_v4 = vld [vmem:[#allocation10 + $0x60] sm:$0xff]  ;;  %v977_v6 = vld [vmem:[#allocation10 + $0x50] sm:$0xff]  ;;  %v976_v7 = vld [vmem:[#allocation10 + $0x48] sm:$0xff] }
 0x14c   : > { %v974_v9 = vld [vmem:[#allocation10 + $0x38] sm:$0xff] }
 0x14d   : > { %v636_v14 = vmul.f32 %v1268_v8, %v629_v10  ;;  %v628_v15 = vadd.f32 %v619_v13, %v528_v11  ;;  %v973_v10 = vld [vmem:[#allocation10 + $0x30] sm:$0xff]  ;;  %v972_v11 = vld [vmem:[#allocation10 + $0x28] sm:$0xff]  ;;  %v970_v13 = vld [vmem:[#allocation10 + $0x18] sm:$0xff] }
 0x14f   : > { %v643_v16 = vadd.f32 %v1269_v12, %v636_v14  ;;  %v635_v17 = vmul.f32 %v1268_v8, %v628_v15  ;;  %v975_v8 = vld [vmem:[#allocation10 + $0x40] sm:$0xff]  ;;  %v969_v14 = vld [vmem:[#allocation10 + $0x10] sm:$0xff]  ;;  %v968_v15 = vld [vmem:[#allocation10 + $0x8] sm:$0xff] }
 0x151   : > { %v647_v18 = vmin.f32 %v643_v16, 0.0  ;;  %v642_v19 = vadd.f32 %v1269_v12, %v635_v17  ;;  %vm645_vm2 = vcmp.gt.f32.partialorder %v643_v16, 0.0  ;;  %v971_v12 = vld [vmem:[#allocation10 + $0x20] sm:$0xff] }
 0x153   : > { %v650_v20 = vmul.f32 1.442695, %v647_v18  ;;  %v646_v21 = vmin.f32 %v642_v19, 0.0  ;;  %vm644_vm3 = vcmp.gt.f32.partialorder %v642_v19, 0.0 }
 0x155   : > { %1615 = vpow2.f32 %v650_v20  ;;  %v648_v22 = vmul.f32 1.442695, %v646_v21 }
 0x157   : > { %1617 = vpow2.f32 %v648_v22 }
 0x162   : > { %v1616_v23 = vpop.eup %1615 }
 0x163   : > { %v1271_v24 = vadd.f32 -1.0, %v1616_v23  ;;  %v1272_v23 = vld [vmem:[%s2103_s4] ss:$0 sm:$0xff] }
 0x164   : > { %v1618_v25 = vpop.eup %1617 }
 0x165   : > { %v655_v26 = vsel %vm645_vm2, %v643_v16, %v1271_v24  ;;  %v1270_v27 = vadd.f32 -1.0, %v1618_v25  ;;  %v967_v16 = vld [vmem:[#allocation10] sm:$0xff] }
 0x166   : > { %657 = vst [vmem:[#allocation3 + $0x9] sm:$0xff] %v655_v26 }
 0x167   : > { %v654_v28 = vsel %vm644_vm3, %v642_v19, %v1270_v27 }
 0x168   : > { %656 = vst [vmem:[#allocation3 + $0x1] sm:$0xff] %v654_v28  ;;  %1457 = vmatprep.mubr.f32.mxu1 %v654_v28 }
 0x169   : > { %1458 = vmatmul.mubr.f32.vlgmr.msra.gmra.mxu1 %v655_v26  ;;  %v1273_v26 = vld [vmem:[%s2103_s4 + $0x1] ss:$0 sm:$0xff] }
 0x16a   : > { %1496 = vmatpush3.msra.mxu1 %v863_v61  ;;  %v985_v61 = vld [vmem:[#allocation10 + $0x90] sm:$0xff] }
 0x16b   : > { %1497 = vmatprep.subr.mxu1 %v862_v29 }
 0x16c   : > { %1498 = vmatpush3.msra.mxu1 %v862_v29 }
 0x16d   : > { %1499 = vmatprep.subr.mxu1 %v861_v30  ;;  %v846_v47 = vld [vmem:[#allocation3 + $0xa] sm:$0xff] }
 0x16e   : > { %1500 = vmatpush3.msra.mxu1 %v861_v30 }
 0x16f   : > { %v658_v33 = vld [vmem:[#allocation3] sm:$0xff]  ;;  %v659_v34 = vld [vmem:[#allocation3 + $0x8] sm:$0xff]  ;;  %1501 = vmatprep.subr.mxu1 %v860_v31 }
 0x170   : > { %v845_v35 = vld [vmem:[#allocation3 + $0x2] sm:$0xff]  ;;  %1492 = vmatprep.mubr.f32.mxu0 %v658_v33  ;;  %1502 = vmatpush3.msra.mxu1 %v860_v31 }
 0x171   : > { %1527 = vmatprep.mubr.f32.mxu1 %v845_v35  ;;  %1493 = vmatmul.mubr.f32.vlgmr.msra.gmra.mxu0 %v659_v34 }
 0x172   : > { %1503 = vmatprep.subr.mxu1 %v859_v32  ;;  %1063 = vmatprep.mubr.f32.mxu0 %v1811_v0 }
 0x173   : > { %1504 = vmatpush3.msra.mxu1 %v859_v32  ;;  %1000 = vmatpush1.msra.mxu0 %v997_v49 }
 0x174   : > { %1505 = vmatprep.subr.mxu1 %v858_v36  ;;  %1001 = vmatprep.subr.mxu0 %v996_v50 }
 0x175   : > { %1506 = vmatpush3.msra.mxu1 %v858_v36  ;;  %1002 = vmatpush1.msra.mxu0 %v995_v51 }
 0x176   : > { %1507 = vmatprep.subr.mxu1 %v857_v37  ;;  %1003 = vmatprep.subr.mxu0 %v994_v52 }
 0x177   : > { %1508 = vmatpush3.msra.mxu1 %v857_v37  ;;  %1004 = vmatpush1.msra.mxu0 %v993_v53  ;;  %v1276_v53 = vld [vmem:[%s2105_s6] ss:$0 sm:$0xff] }
 0x178   : > { %1509 = vmatprep.subr.mxu1 %v856_v38  ;;  %1005 = vmatprep.subr.mxu0 %v992_v54 }
 0x179   : > { %1510 = vmatpush3.msra.mxu1 %v856_v38  ;;  %1006 = vmatpush1.msra.mxu0 %v991_v55 }
 0x17a   : > { %1511 = vmatprep.subr.mxu1 %v855_v39  ;;  %1007 = vmatprep.subr.mxu0 %v990_v56 }
 0x17b   : > { %1512 = vmatpush3.msra.mxu1 %v855_v39  ;;  %1008 = vmatpush1.msra.mxu0 %v989_v57 }
 0x17c   : > { %1513 = vmatprep.subr.mxu1 %v854_v40  ;;  %1009 = vmatprep.subr.mxu0 %v988_v58 }
 0x17d   : > { %1514 = vmatpush3.msra.mxu1 %v854_v40  ;;  %1010 = vmatpush1.msra.mxu0 %v987_v59 }
 0x17e   : > { %1515 = vmatprep.subr.mxu1 %v853_v41  ;;  %1011 = vmatprep.subr.mxu0 %v986_v60 }
 0x17f   : > { %1516 = vmatpush3.msra.mxu1 %v853_v41  ;;  %1012 = vmatpush1.msra.mxu0 %v985_v61 }
 0x180   : > { %1517 = vmatprep.subr.mxu1 %v852_v42  ;;  %1013 = vmatprep.subr.mxu0 %v984_v62 }
 0x181   : > { %1518 = vmatpush3.msra.mxu1 %v852_v42  ;;  %1014 = vmatpush1.msra.mxu0 %v983_v63 }
 0x182   : > { %1519 = vmatprep.subr.mxu1 %v851_v43  ;;  %1015 = vmatprep.subr.mxu0 %v982_v1 }
 0x183   : > { %1520 = vmatpush3.msra.mxu1 %v851_v43  ;;  %1016 = vmatpush1.msra.mxu0 %v981_v2  ;;  %v1812_v43 = vmov 1935823168  }
 0x184   : > { %1521 = vmatprep.subr.mxu1 %v850_v44  ;;  %1017 = vmatprep.subr.mxu0 %v980_v3 }
 0x185   : > { %1522 = vmatpush3.msra.mxu1 %v850_v44  ;;  %1018 = vmatpush1.msra.mxu0 %v979_v4  ;;  %v1089_v44 = vunpack.c.l.s4 %v1812_v43 }
 0x186   : > { %1523 = vmatprep.subr.mxu1 %v849_v45  ;;  %1019 = vmatprep.subr.mxu0 %v978_v5 }
 0x187   : > { %1524 = vmatpush3.msra.mxu1 %v849_v45  ;;  %1020 = vmatpush1.msra.mxu0 %v977_v6  ;;  %v1091_v45 = vlaneseq }
 0x188   : > { %1525 = vmatprep.subr.mxu1 %v848_v46  ;;  %1021 = vmatprep.subr.mxu0 %v976_v7 }
 0x189   : > { %1526 = vmatpush3.msra.mxu1 %v848_v46  ;;  %1022 = vmatpush1.msra.mxu0 %v975_v8  ;;  %v1090_v46 = vunpack.c.0.s8 %v1089_v44 }
 0x18a   : > { %1528 = vmatmul.mubr.f32.vlgmr.msra.gmra.mxu1 %v846_v47  ;;  %1023 = vmatprep.subr.mxu0 %v974_v9  ;;  %v1092_v47 = vshrl.u32 %v1091_v45, 7 }
 0x18b   : > { %1024 = vmatpush1.msra.mxu0 %v973_v10 }
 0x18c   : > { %1025 = vmatprep.subr.mxu0 %v972_v11  ;;  %v1093_v49 = vsub.s32 %v1090_v46, %v1092_v47 }
 0x18d   : > { %1026 = vmatpush1.msra.mxu0 %v971_v12 }
 0x18e   : > { %1027 = vmatprep.subr.mxu0 %v970_v13 }
 0x18f   : > { %1028 = vmatpush1.msra.mxu0 %v969_v14 }
 0x190   : > { %1029 = vmatprep.subr.mxu0 %v968_v15 }
 0x191   : > { %1030 = vmatpush1.msra.mxu0 %v967_v16 }
 0x229   : > { %v1459_v17 = vpop.f32.mrf.mxu1 }
 0x22b   : > { %v761_v19 = vpop.f32.mrf.mxu1 }
 0x231   : > { %v1494_v18 = vpop.f32.mrf.mxu0 }
 0x232   : > { %v842_v21 = vadd.f32 %v1494_v18, %v1459_v17 }
 0x233   : > { %v836_v20 = vpop.f32.mrf.mxu0 }
 0x234   : > { %v837_v24 = vadd.f32 %v836_v20, %v761_v19 }
 0x24a   : > { %v1529_v22 = vpop.f32.mrf.mxu1 }
 0x24b   : > { %v940_v25 = vadd.f32 %v1529_v22, %v842_v21 }
 0x24c   : > { %v930_v27 = vpop.f32.mrf.mxu1 }
 0x24d   : > { %v947_v28 = vmul.f32 %v1272_v23, %v940_v25  ;;  %v939_v29 = vadd.f32 %v930_v27, %v837_v24 }
 0x24f   : > { %v954_v30 = vadd.f32 %v1273_v26, %v947_v28  ;;  %v946_v31 = vmul.f32 %v1272_v23, %v939_v29 }
 0x251   : > { %v958_v32 = vmin.f32 %v954_v30, 0.0  ;;  %v953_v33 = vadd.f32 %v1273_v26, %v946_v31  ;;  %vm956_vm5 = vcmp.gt.f32.partialorder %v954_v30, 0.0 }
 0x253   : > { %v961_v34 = vmul.f32 1.442695, %v958_v32  ;;  %v957_v35 = vmin.f32 %v953_v33, 0.0  ;;  %vm955_vm4 = vcmp.gt.f32.partialorder %v953_v33, 0.0 }
 0x255   : > { %v959_v36 = vmul.f32 1.442695, %v957_v35  ;;  %1619 = vpow2.f32 %v961_v34 }
 0x257   : > { %1621 = vpow2.f32 %v959_v36 }
 0x262   : > { %v1620_v37 = vpop.eup %1619 }
 0x263   : > { %v1275_v41 = vadd.f32 -1.0, %v1620_v37 }
 0x264   : > { %v1622_v38 = vpop.eup %1621 }
 0x265   : > { %v1274_v39 = vadd.f32 -1.0, %v1622_v38  ;;  %v966_v42 = vsel %vm956_vm5, %v954_v30, %v1275_v41 }
 0x267   : > { %v965_v40 = vsel %vm955_vm4, %v953_v33, %v1274_v39 }
 0x268   : > { %1064 = vmatmul.mubr.f32.vlgmr.msra.gmra.mxu0 %v965_v40 }
 0x269   : > { %1069 = vmatprep.mubr.f32.mxu0 %v1811_v0 }
 0x26c   : > { %1070 = vmatmul.mubr.f32.gmra.mxu0 %v966_v42 }
 0x328   : > { %v1065_v48 = vpop.f32.mrf.mxu0 }
 0x32a   : > { %v1067_v50 = vpop.f32.mrf.mxu0 }
 0x32b   : > { %v1080_v51 = vcombine.low %v1065_v48, %v1067_v50  ;;  %v1081_v52 = vcombine.high %v1065_v48, %v1067_v50 }
 0x32c   : > { %v1071_v0 = vpop.f32.mrf.mxu0 }
 0x32d   : > { %v1094_v54 = vrot.slane %v1080_v51, %v1093_v49  ;;  %v1101_v55 = vrot.slane %v1081_v52, %v1093_v49 }
 0x32e   : > { %v1073_v56 = vpop.f32.mrf.mxu0 }
 0x32f   : > { %v1123_v57 = vadd.f32 %v1276_v53, %v1094_v54  ;;  %v1124_v58 = vadd.f32 %v1276_v53, %v1101_v55  ;;  %v1082_v59 = vcombine.low %v1071_v0, %v1073_v56  ;;  %v1083_v60 = vcombine.high %v1071_v0, %v1073_v56 }
 0x331   : > { %1127 = vst [vmem:[%s340_s1] sm:$0xff] %v1123_v57  ;;  %1128 = vst [vmem:[%s340_s1 + $0x8] sm:$0xff] %v1124_v58  ;;  %v1108_v61 = vrot.slane %v1082_v59, %v1093_v49  ;;  %v1115_v62 = vrot.slane %v1083_v60, %v1093_v49 }
 0x333   : > { %v1125_v63 = vadd.f32 %v1276_v53, %v1108_v61  ;;  %v1126_v1 = vadd.f32 %v1276_v53, %v1115_v62 }
 0x335   : > { %1129 = vst [vmem:[%s340_s1 + $0x10] sm:$0xff] %v1125_v63  ;;  %1130 = vst [vmem:[%s340_s1 + $0x18] sm:$0xff] %v1126_v1 }
 0x336   : > { %1742 = shalt.err (!%p1739_p10)
}
 0x337   : > { %s1743_s12 = scalar_lea.hbm %s2056_s13, 512  ;;  %s1747_s10 = scalar_lea.hbm %s2106_s7, 1024 }
 0x338   : > { %p1744_p6 = scmp.ne.s32.totalorder %s2056_s13, %s1743_s12  ;;  %p1748_p3 = scmp.lt.s32.totalorder %s2056_s13, %s2106_s7 }
 0x339   : > { %p1749_p11 = scmp.lt.s32.totalorder %s1747_s10, %s1743_s12 }
 0x33a   : > { %p1745_p4 = pnand %p1744_p6, %p2129_p1 }
 0x33b   : > { %p1750_p5 = por %p1749_p11, %p1748_p3 }
 0x33c   : > { %p1746_p8 = pneg %p1745_p4 }
 0x33e   : > { %p1751_p7 = pnand %p1750_p5, %p1746_p8 }
 0x340   : > { %1754 = shalt.err (!%p1751_p7)
}
 0x341   : > { %s1814_s30 = smov 128   ;;  %s1815_s9 = smov 8  }
 0x342   : > { %1544 = dma.vmem_to_hbm [thread:$0]  (%p2129_p1), %s2051_s16, 512, %s2056_s13, %s1132_s15, %s1814_s30, %s1814_s30, %s1815_s9  }
 0x343 PF: > { %s1160_s28 = sand.u32 1, %s1789_s24   ;;  %p2130_p12 = scmp.ne.s32.totalorder %s2115_s8, 0 }
 0x344   : > { %p2131_p9 = scmp.ge.s32.totalorder %s1801_s27, 2  ;;  %s1161_s20 = scalar_lea.sflag [#allocation6], %s1160_s28 }
 0x346   : > { %p1561_p13 = pnand %p2131_p9, %p2130_p12 }
 0x348   : > { %p1562_p0 = pneg %p1561_p13 }
 0x34a   : > { %1784 = dma.done.wait (%p1562_p0), %s1161_s20, 512  }
 0x34b   : > { %1786 = vsyncadd (%p1562_p0), %s1161_s20, 4294966784  ;;  %p22_p2 = scmp.ge.s32.totalorder %s1942_s17, 4   ;;  %s2132_s24 = smov %s1793_s25 }
 0x34c   : > { %s2133_s25 = smov %s1797_s26  ;;  %s2134_s26 = smov %s1952_s22 }
 0x34d   : > { %s2135_s27 = smov %s1942_s17  ;;  %24 = sbr.rel (!%p22_p2) target bundleno = 9 (0x9), region = 109 }
 0x352   :  { %1166 = vsyncpa [#allocation5], 1 }
 0x353   :  { %1168 = vsyncpa [#allocation5 + $0x1], 1 }
 0x354   :  { %1169 = vsyncpa [#allocation8], 1 }
 0x355   :  { %1170 = vsyncpa [#allocation11], 1 }
 0x356   :  { %1171 = vsyncpa [#allocation6], 1 }
 0x357   :  { %1173 = vsyncpa [#allocation6 + $0x1], 1 }

</bundles_post_ra>
